<compile_context>
chip_gen: v5e
topology: v5e:2x2
jax: 0.10.0
libtpu: 0.0.40
codegen_flags: <defaults>
</compile_context>

<pallas_src>
import jax
import jax.numpy as jnp
from jax.experimental import pallas as pl
from jax.experimental.pallas import tpu as pltpu

_SUBLANES = 8


def _make_kernel(num_classes, lanes, cols, n_total, nblk, inv_n, needs_mask):
    """Builds the kernel, closed over static (Python) tiling parameters only."""
    neg = -1e9  # Python float -> inlined literal (no captured jax.Array!)

    def kernel(pred_ref, host_ref, tgt_ref, out_ref, acc_ref):
        # pred_ref: (C, 8, L) logits   host_ref/tgt_ref: (8, L) int32
        # out_ref:  (1, 1) f32 mean loss   acc_ref: (8, L) f32 partial sums
        i = pl.program_id(0)

        @pl.when(i == 0)
        def _():
            acc_ref[...] = jnp.zeros_like(acc_ref)

        host = host_ref[...]                              # (8, L) int32
        tgt = tgt_ref[...]                                # (8, L) int32
        # One full-tile read + one cast (no-op for f32 inputs).
        logits = pred_ref[...].astype(jnp.float32)        # (C, 8, L)

        # Fused class pass (C is small -- the number of doors): hold the C
        # host-masked rows live for max, sum-exp and target-select.
        rows = []
        m = jnp.full((_SUBLANES, lanes), neg, jnp.float32)
        for c_idx in range(num_classes):
            row = jnp.where(host == c_idx, neg, logits[c_idx])   # mask host door
            rows.append(row)
            m = jnp.maximum(m, row)

        s = jnp.zeros((_SUBLANES, lanes), jnp.float32)
        tgt_logit = jnp.zeros((_SUBLANES, lanes), jnp.float32)
        for c_idx in range(num_classes):
            row = rows[c_idx]
            s = s + jnp.exp(row - m)                      # EUP
            tgt_logit = jnp.where(tgt == c_idx, row, tgt_logit)

        per_example = m + jnp.log(s) - tgt_logit          # (8, L) NLL

        if needs_mask:
            # Zero out positions that are (a) beyond the array in a partial
            # last block (garbage / possibly NaN -- where() does not propagate
            # NaN from the unselected branch) or (b) the <=7 sublane-pad
            # examples (index >= n_total).  Applied on every step: padded
            # positions are not guaranteed to land in the last block when the
            # last block is narrow, and the kernel is HBM-bound so these few
            # VPU ops are free filler.
            lane = jax.lax.broadcasted_iota(jnp.int32, (_SUBLANES, lanes), 1)
            row_i = jax.lax.broadcasted_iota(jnp.int32, (_SUBLANES, lanes), 0)
            gcol = i * lanes + lane
            valid = (gcol < cols) & (row_i * cols + gcol < n_total)
            per_example = jnp.where(valid, per_example, 0.0)

        # Per-position partial accumulation (no per-step cross-lane reduce).
        acc_ref[...] += per_example

        # Single cross-lane/sublane reduction + mean scale + store at the end.
        @pl.when(i == nblk - 1)
        def _():
            out_ref[...] = (jnp.sum(acc_ref[...]) * inv_n).reshape(1, 1)

    return kernel


def monty_hall_loss(pred, host_idx, target_idx, *, lane_block=None):
    """pred: [N, C] logits; host_idx/target_idx: [N] int door indices.

    Returns the scalar mean cross-entropy of the host-masked logits.
    """
    n, c = pred.shape
    itemsize = pred.dtype.itemsize
    pred_bytes = n * c * itemsize

    # Sublane-packed layout: examples live on an (8, cols) grid,
    # example index = row * cols + col.
    cols = -(-n // _SUBLANES)
    pad_n = _SUBLANES * cols - n                          # <= 7 examples

    # Lane-block sizing: ~3 MiB of input per grid step so the ~0.35us/step
    # cost is amortized, while 2x double-buffered inputs + temps + acc stay
    # well inside a 32 MiB scoped VMEM limit (also fine on v7x's 64 MiB).
    per_col_bytes = _SUBLANES * (c * itemsize + 8)        # pred + host + tgt
    if lane_block is None:
        lane_block = (3 * 1024 * 1024) // per_col_bytes
    lane_block = max(128, (int(lane_block) // 128) * 128)
    if cols <= lane_block:
        lanes = cols                                      # single full block
        nblk = 1
    else:
        lanes = lane_block                                # multiple of 128
        nblk = -(-cols // lanes)                          # partial last block OK
    needs_mask = (pad_n > 0) or (cols % lanes != 0)

    # Layout plumbing (only HBM copy): tiny pad to a multiple of 8, then
    # present logits as (C, 8, cols) and indices as (8, cols) int32.
    if pad_n:
        pred = jnp.pad(pred, ((0, pad_n), (0, 0)))
        host_idx = jnp.pad(host_idx, (0, pad_n))
        target_idx = jnp.pad(target_idx, (0, pad_n))
    pred3 = jnp.transpose(pred).reshape(c, _SUBLANES, cols)
    host2 = host_idx.astype(jnp.int32).reshape(_SUBLANES, cols)
    tgt2 = target_idx.astype(jnp.int32).reshape(_SUBLANES, cols)

    kernel = _make_kernel(c, lanes, cols, n, nblk, 1.0 / n, needs_mask)

    cost = pl.CostEstimate(
        flops=(7 * c + 13) * n,
        transcendentals=(c + 1) * n,
        bytes_accessed=pred_bytes + 8 * n + 4,
    )

    out = pl.pallas_call(
        kernel,
        out_shape=jax.ShapeDtypeStruct((1, 1), jnp.float32),
        grid=(nblk,),
        in_specs=[
            pl.BlockSpec((c, _SUBLANES, lanes), lambda i: (0, 0, i)),  # logits
            pl.BlockSpec((_SUBLANES, lanes), lambda i: (0, i)),        # host
            pl.BlockSpec((_SUBLANES, lanes), lambda i: (0, i)),        # target
        ],
        out_specs=pl.BlockSpec((1, 1), lambda i: (0, 0)),
        scratch_shapes=[pltpu.VMEM((_SUBLANES, lanes), jnp.float32)],
        compiler_params=pltpu.CompilerParams(
            dimension_semantics=("arbitrary",),           # reduction axis
            vmem_limit_bytes=32 * 1024 * 1024,
        ),
        cost_estimate=cost,
    )(pred3, host2, tgt2)

    return out[0, 0]


def _reference(pred, host_idx, target_idx):
    """Pure-JAX reference for validation."""
    c = pred.shape[-1]
    host_mask = jax.nn.one_hot(host_idx, c, dtype=jnp.float32)
    rescaled = jnp.where(host_mask > 0.5, -1e9, pred.astype(jnp.float32))
    logp = jax.nn.log_softmax(rescaled, axis=-1)
    nll = -jnp.take_along_axis(logp, target_idx[:, None], axis=-1)[:, 0]
    return jnp.mean(nll)


if __name__ == "__main__":
    key = jax.random.PRNGKey(0)
    k1, k2, k3, k4, k5, k6 = jax.random.split(key, 6)

    C = 4  # doors

    # Case 1: 1000 games -> cols=125, single full-width block, sublane layout.
    N1 = 1000
    pred1 = jax.random.normal(k1, (N1, C), dtype=jnp.float32)
    tgt1 = jax.random.randint(k2, (N1,), 0, C, dtype=jnp.int32)
    host1 = (tgt1 + 1 + jax.random.randint(k3, (N1,), 0, C - 1,
                                           dtype=jnp.int32)) % C  # host != target

    loss1 = monty_hall_loss(pred1, host1, tgt1)
    jax.block_until_ready(loss1)
    ref1 = _reference(pred1, host1, tgt1)
    assert jnp.allclose(loss1, ref1, atol=1e-5, rtol=1e-5), (loss1, ref1)

    # Case 2: N=4001 with a forced small lane block: multi-step accumulation,
    # partial last block and the <=7-example sublane pad are all exercised,
    # plus the jit path.
    N2 = 4001
    pred2 = jax.random.normal(k4, (N2, C), dtype=jnp.float32)
    tgt2 = jax.random.randint(k5, (N2,), 0, C, dtype=jnp.int32)
    host2 = (tgt2 + 1 + jax.random.randint(k6, (N2,), 0, C - 1,
                                           dtype=jnp.int32)) % C

    loss2 = jax.jit(monty_hall_loss, static_argnames=("lane_block",))(
        pred2, host2, tgt2, lane_block=128)
    jax.block_until_ready(loss2)
    ref2 = _reference(pred2, host2, tgt2)
    assert jnp.allclose(loss2, ref2, atol=1e-5, rtol=1e-5), (loss2, ref2)

    print("KERNEL_OK")
</pallas_src>

<mosaic_0001>
module attributes {stable_mosaic.version = 11 : i64} {
  func.func @kernel(%arg0: i32, %arg1: memref<4x8x125xf32, #tpu.memory_space<vmem>>, %arg2: memref<8x125xi32, #tpu.memory_space<vmem>>, %arg3: memref<8x125xi32, #tpu.memory_space<vmem>>, %arg4: memref<1x1xf32, #tpu.memory_space<vmem>>, %arg5: memref<8x125xf32, #tpu.memory_space<vmem>>) attributes {dimension_semantics = [#tpu.dimension_semantics<arbitrary>], iteration_bounds = array<i64: 1>, scalar_prefetch = 0 : i64, scratch_operands = 1 : i64, tpu.core_type = #tpu.core_type<tc>, window_params = [{transform_indices = @transform_0, window_bounds = array<i64: 4, 8, 125>}, {transform_indices = @transform_1, window_bounds = array<i64: 8, 125>}, {transform_indices = @transform_2, window_bounds = array<i64: 8, 125>}, {pipeline_mode = #tpu.pipeline_mode<synchronous>, transform_indices = @transform_3, window_bounds = array<i64: 1, 1>}]} {
    %c0_i32 = arith.constant 0 : i32
    %0 = arith.cmpi eq, %arg0, %c0_i32 : i32
    %1 = arith.extui %0 : i1 to i32
    %c0_i32_0 = arith.constant 0 : i32
    %2 = arith.cmpi ne, %1, %c0_i32_0 : i32
    scf.if %2 {
      %cst_24 = arith.constant 0.000000e+00 : f32
      %70 = vector.broadcast %cst_24 : f32 to vector<8x125xf32>
      %c0_25 = arith.constant 0 : index
      %c0_26 = arith.constant 0 : index
      %71 = vector.load %arg5[%c0_25, %c0_26] : memref<8x125xf32, #tpu.memory_space<vmem>>, vector<8x125xf32>
      tpu.vector_store %arg5[%c0_25, %c0_26], %70 {strides = array<i32>} : memref<8x125xf32, #tpu.memory_space<vmem>>, vector<8x125xf32>,
    } else {
    }
    %c0 = arith.constant 0 : index
    %c0_1 = arith.constant 0 : index
    %3 = vector.load %arg2[%c0, %c0_1] : memref<8x125xi32, #tpu.memory_space<vmem>>, vector<8x125xi32>
    %c0_2 = arith.constant 0 : index
    %c0_3 = arith.constant 0 : index
    %4 = vector.load %arg3[%c0_2, %c0_3] : memref<8x125xi32, #tpu.memory_space<vmem>>, vector<8x125xi32>
    %c0_4 = arith.constant 0 : index
    %c0_5 = arith.constant 0 : index
    %c0_6 = arith.constant 0 : index
    %5 = vector.load %arg1[%c0_4, %c0_5, %c0_6] : memref<4x8x125xf32, #tpu.memory_space<vmem>>, vector<4x8x125xf32>
    %cst = arith.constant -1.000000e+09 : f32
    %6 = vector.broadcast %cst : f32 to vector<8x125xf32>
    %c0_i32_7 = arith.constant 0 : i32
    %7 = vector.broadcast %c0_i32_7 : i32 to vector<8x125xi32>
    %8 = arith.cmpi eq, %3, %7 : vector<8x125xi32>
    %9 = vector.extract_strided_slice %5 {offsets = [0, 0, 0], sizes = [1, 8, 125], strides = [1, 1, 1]} : vector<4x8x125xf32> to vector<1x8x125xf32>
    %10 = vector.shape_cast %9 : vector<1x8x125xf32> to vector<8x125xf32>
    %cst_8 = arith.constant -1.000000e+09 : f32
    %11 = vector.broadcast %cst_8 : f32 to vector<8x125xf32>
    %12 = arith.select %8, %11, %10 : vector<8x125xi1>, vector<8x125xf32>
    %13 = arith.maximumf %6, %12 : vector<8x125xf32>
    %c1_i32 = arith.constant 1 : i32
    %14 = vector.broadcast %c1_i32 : i32 to vector<8x125xi32>
    %15 = arith.cmpi eq, %3, %14 : vector<8x125xi32>
    %16 = vector.extract_strided_slice %5 {offsets = [1, 0, 0], sizes = [1, 8, 125], strides = [1, 1, 1]} : vector<4x8x125xf32> to vector<1x8x125xf32>
    %17 = vector.shape_cast %16 : vector<1x8x125xf32> to vector<8x125xf32>
    %cst_9 = arith.constant -1.000000e+09 : f32
    %18 = vector.broadcast %cst_9 : f32 to vector<8x125xf32>
    %19 = arith.select %15, %18, %17 : vector<8x125xi1>, vector<8x125xf32>
    %20 = arith.maximumf %13, %19 : vector<8x125xf32>
    %c2_i32 = arith.constant 2 : i32
    %21 = vector.broadcast %c2_i32 : i32 to vector<8x125xi32>
    %22 = arith.cmpi eq, %3, %21 : vector<8x125xi32>
    %23 = vector.extract_strided_slice %5 {offsets = [2, 0, 0], sizes = [1, 8, 125], strides = [1, 1, 1]} : vector<4x8x125xf32> to vector<1x8x125xf32>
    %24 = vector.shape_cast %23 : vector<1x8x125xf32> to vector<8x125xf32>
    %cst_10 = arith.constant -1.000000e+09 : f32
    %25 = vector.broadcast %cst_10 : f32 to vector<8x125xf32>
    %26 = arith.select %22, %25, %24 : vector<8x125xi1>, vector<8x125xf32>
    %27 = arith.maximumf %20, %26 : vector<8x125xf32>
    %c3_i32 = arith.constant 3 : i32
    %28 = vector.broadcast %c3_i32 : i32 to vector<8x125xi32>
    %29 = arith.cmpi eq, %3, %28 : vector<8x125xi32>
    %30 = vector.extract_strided_slice %5 {offsets = [3, 0, 0], sizes = [1, 8, 125], strides = [1, 1, 1]} : vector<4x8x125xf32> to vector<1x8x125xf32>
    %31 = vector.shape_cast %30 : vector<1x8x125xf32> to vector<8x125xf32>
    %cst_11 = arith.constant -1.000000e+09 : f32
    %32 = vector.broadcast %cst_11 : f32 to vector<8x125xf32>
    %33 = arith.select %29, %32, %31 : vector<8x125xi1>, vector<8x125xf32>
    %34 = arith.maximumf %27, %33 : vector<8x125xf32>
    %cst_12 = arith.constant 0.000000e+00 : f32
    %35 = vector.broadcast %cst_12 : f32 to vector<8x125xf32>
    %cst_13 = arith.constant 0.000000e+00 : f32
    %36 = vector.broadcast %cst_13 : f32 to vector<8x125xf32>
    %37 = arith.subf %12, %34 : vector<8x125xf32>
    %38 = math.exp %37 : vector<8x125xf32>
    %39 = arith.addf %35, %38 : vector<8x125xf32>
    %c0_i32_14 = arith.constant 0 : i32
    %40 = vector.broadcast %c0_i32_14 : i32 to vector<8x125xi32>
    %41 = arith.cmpi eq, %4, %40 : vector<8x125xi32>
    %42 = arith.select %41, %12, %36 : vector<8x125xi1>, vector<8x125xf32>
    %43 = arith.subf %19, %34 : vector<8x125xf32>
    %44 = math.exp %43 : vector<8x125xf32>
    %45 = arith.addf %39, %44 : vector<8x125xf32>
    %c1_i32_15 = arith.constant 1 : i32
    %46 = vector.broadcast %c1_i32_15 : i32 to vector<8x125xi32>
    %47 = arith.cmpi eq, %4, %46 : vector<8x125xi32>
    %48 = arith.select %47, %19, %42 : vector<8x125xi1>, vector<8x125xf32>
    %49 = arith.subf %26, %34 : vector<8x125xf32>
    %50 = math.exp %49 : vector<8x125xf32>
    %51 = arith.addf %45, %50 : vector<8x125xf32>
    %c2_i32_16 = arith.constant 2 : i32
    %52 = vector.broadcast %c2_i32_16 : i32 to vector<8x125xi32>
    %53 = arith.cmpi eq, %4, %52 : vector<8x125xi32>
    %54 = arith.select %53, %26, %48 : vector<8x125xi1>, vector<8x125xf32>
    %55 = arith.subf %33, %34 : vector<8x125xf32>
    %56 = math.exp %55 : vector<8x125xf32>
    %57 = arith.addf %51, %56 : vector<8x125xf32>
    %c3_i32_17 = arith.constant 3 : i32
    %58 = vector.broadcast %c3_i32_17 : i32 to vector<8x125xi32>
    %59 = arith.cmpi eq, %4, %58 : vector<8x125xi32>
    %60 = arith.select %59, %33, %54 : vector<8x125xi1>, vector<8x125xf32>
    %61 = math.log %57 : vector<8x125xf32>
    %62 = arith.addf %34, %61 : vector<8x125xf32>
    %63 = arith.subf %62, %60 : vector<8x125xf32>
    %c0_18 = arith.constant 0 : index
    %c0_19 = arith.constant 0 : index
    %64 = vector.load %arg5[%c0_18, %c0_19] : memref<8x125xf32, #tpu.memory_space<vmem>>, vector<8x125xf32>
    %65 = arith.addf %64, %63 : vector<8x125xf32>
    %c0_20 = arith.constant 0 : index
    %c0_21 = arith.constant 0 : index
    %66 = vector.load %arg5[%c0_20, %c0_21] : memref<8x125xf32, #tpu.memory_space<vmem>>, vector<8x125xf32>
    tpu.vector_store %arg5[%c0_20, %c0_21], %65 {strides = array<i32>} : memref<8x125xf32, #tpu.memory_space<vmem>>, vector<8x125xf32>,
    %c0_i32_22 = arith.constant 0 : i32
    %67 = arith.cmpi eq, %arg0, %c0_i32_22 : i32
    %68 = arith.extui %67 : i1 to i32
    %c0_i32_23 = arith.constant 0 : i32
    %69 = arith.cmpi ne, %68, %c0_i32_23 : i32
    scf.if %69 {
      %c0_24 = arith.constant 0 : index
      %c0_25 = arith.constant 0 : index
      %70 = vector.load %arg5[%c0_24, %c0_25] : memref<8x125xf32, #tpu.memory_space<vmem>>, vector<8x125xf32>
      %71 = vector.shape_cast %70 : vector<8x125xf32> to vector<1x8x125xf32>
      %cst_26 = arith.constant dense<0.000000e+00> : vector<1xf32>
      %72 = vector.multi_reduction <add>, %71, %cst_26 [1, 2] : vector<1x8x125xf32> to vector<1xf32>
      %73 = vector.shape_cast %72 : vector<1xf32> to vector<1x1x1xf32>
      %74 = vector.extract %73[0, 0, 0] : f32 from vector<1x1x1xf32>
      %cst_27 = arith.constant 1.000000e-03 : f32
      %75 = arith.mulf %74, %cst_27 : f32
      %76 = vector.broadcast %75 : f32 to vector<1x1xf32>
      %c0_28 = arith.constant 0 : index
      %c0_29 = arith.constant 0 : index
      %77 = vector.load %arg4[%c0_28, %c0_29] : memref<1x1xf32, #tpu.memory_space<vmem>>, vector<1x1xf32>
      tpu.vector_store %arg4[%c0_28, %c0_29], %76 {strides = array<i32>} : memref<1x1xf32, #tpu.memory_space<vmem>>, vector<1x1xf32>,
    } else {
    }
    return
  }
  func.func @transform_0(%arg0: i32) -> (i32, i32, i32) {
    %c0_i32 = arith.constant 0 : i32
    %c0_i32_0 = arith.constant 0 : i32
    %c0_i32_1 = arith.constant 0 : i32
    return %c0_i32, %c0_i32_0, %arg0 : i32, i32, i32
  }
  func.func @transform_1(%arg0: i32) -> (i32, i32) {
    %c0_i32 = arith.constant 0 : i32
    %c0_i32_0 = arith.constant 0 : i32
    return %c0_i32, %arg0 : i32, i32
  }
  func.func @transform_2(%arg0: i32) -> (i32, i32) {
    %c0_i32 = arith.constant 0 : i32
    %c0_i32_0 = arith.constant 0 : i32
    return %c0_i32, %arg0 : i32, i32
  }
  func.func @transform_3(%arg0: i32) -> (i32, i32) {
    %c0_i32 = arith.constant 0 : i32
    %c0_i32_0 = arith.constant 0 : i32
    %c0_i32_1 = arith.constant 0 : i32
    return %c0_i32, %c0_i32_0 : i32, i32
  }
}

</mosaic_0001>

<bundles_post_ra>
// kernel: tpu_custom_call.1
= control target key start
LH: loop header
LB: loop body
LE: loop exit
PB: predicated region body
PF: predicated region fallthrough
CT: control target
= control target key end

     0   :  { %8 = vsyncpa [#allocation4], 0  ;;  %s313_s0 = inlined_call_operand.hbm [shape: f32[4,8,125], index: 0, kind: input, shape index: {}]   ;;  %s314_s1 = inlined_call_operand.hbm [shape: s32[8,125], index: 1, kind: input, shape index: {}]   ;;  %s315_s2 = inlined_call_operand.hbm [shape: s32[8,125], index: 2, kind: input, shape index: {}]   ;;  %s316_s3 = inlined_call_operand.hbm [shape: f32[1,1], index: 3, kind: output, shape index: {}]  }
   0x1   :  { %9 = vsyncpa [#allocation7], 0  ;;  %s29_s14 = sshll.u32 %s314_s1, 4  ;;  %s30_s14 = int_to_ptr.hbm [resolvable:$true] %s29_s14 }
   0x2   :  { %10 = vsyncpa [#allocation5], 0  ;;  %s271_s15 = smov [#allocation6]   ;;  %s15_s19 = sshll.u32 %s313_s0, 4  ;;  %s16_s19 = int_to_ptr.hbm [resolvable:$true] %s15_s19 }
   0x3   :  { %s31_s16 = sshll.u32 %s271_s15, 4  ;;  %s272_s20 = smov [#allocation3]   ;;  %s32_s16 = int_to_ptr.vmem [resolvable:$true] %s31_s16 }
   0x4   :  { %34 = dma.hbm_to_vmem [thread:$0]  %s30_s14, 128, %s32_s16, [#allocation7]  }
   0x5   :  { %s17_s21 = sshll.u32 %s272_s20, 4  ;;  %s273_s22 = smov 128   ;;  %s18_s21 = int_to_ptr.vmem [resolvable:$true] %s17_s21 }
   0x6   :  { %s274_s23 = smov 8   ;;  %s40_s1 = sshll.u32 %s315_s2, 4  ;;  %s41_s1 = int_to_ptr.hbm [resolvable:$true] %s40_s1 }
   0x7   :  { %23 = dma.hbm_to_vmem [thread:$0]  %s16_s19, 512, %s18_s21, [#allocation4], %s273_s22, %s273_s22, %s274_s23  }
   0x8   :  { %s275_s26 = smov [#allocation8]  }
   0x9   :  { %s42_s27 = sshll.u32 %s275_s26, 4  ;;  %s43_s27 = int_to_ptr.vmem [resolvable:$true] %s42_s27 }
   0xa   :  { %45 = dma.hbm_to_vmem [thread:$0]  %s41_s1, 128, %s43_s27, [#allocation7]  }
   0xb   :  { %265 = dma.done.wait [#allocation4], 512  }
   0xc   :  { %266 = vsyncadd [#allocation4], 4294966784 }
   0xd   :  { %267 = dma.done.wait [#allocation7], 256  }
   0xe   :  { %268 = vsyncadd [#allocation7], 4294967040  ;;  %vm62_vm0 = vcmask 1022976   ;;  %v276_v0 = vmov 0.0   ;;  %v64_v1 = vld [vmem:[#allocation6] sm:$0xff]  ;;  %v67_v3 = vld [vmem:[#allocation3 + $0x8] sm:$0xff] }
   0xf   :  { %63 = vst.msk [vmem:[#allocation2] sm:$0xff] %vm62_vm0, %v276_v0  ;;  %v66_v2 = vld [vmem:[#allocation3] sm:$0xff]  ;;  %v68_v4 = vld [vmem:[#allocation3 + $0x10] sm:$0xff]  ;;  %vm70_vm1 = vcmp.eq.s32.totalorder %v64_v1, 0  ;;  %vm73_vm2 = vcmp.eq.s32.totalorder %v64_v1, 1  ;;  %vm76_vm3 = vcmp.eq.s32.totalorder %v64_v1, 2 }
  0x10   :  { %v71_v5 = vsel %vm70_vm1, -1e+09, %v66_v2  ;;  %v74_v6 = vsel %vm73_vm2, -1e+09, %v67_v3  ;;  %v69_v7 = vld [vmem:[#allocation3 + $0x18] sm:$0xff]  ;;  %vm79_vm4 = vcmp.eq.s32.totalorder %v64_v1, 3 }
  0x11   :  { %v72_v8 = vmax.f32 %v71_v5, -1e+09  ;;  %v77_v9 = vsel %vm76_vm3, -1e+09, %v68_v4  ;;  %v80_v11 = vsel %vm79_vm4, -1e+09, %v69_v7 }
  0x12   :  { %v65_v24 = vld [vmem:[#allocation8] sm:$0xff]  ;;  %s277_s0 = smov [#allocation9]   ;;  %s139_s30 = sshll.u32 %s316_s3, 4  ;;  %vm130_vm9 = vcmask 0   ;;  %s140_s30 = int_to_ptr.hbm [resolvable:$true] %s139_s30 }
  0x13   :  { %v75_v10 = vmax.f32 %v72_v8, %v74_v6  ;;  %vm86_vm5 = vcmp.eq.s32.totalorder %v65_v24, 0  ;;  %vm92_vm6 = vcmp.eq.s32.totalorder %v65_v24, 1  ;;  %vm98_vm7 = vcmp.eq.s32.totalorder %v65_v24, 2  ;;  %s137_s2 = sshll.u32 %s277_s0, 4  ;;  %s138_s2 = int_to_ptr.vmem [resolvable:$true] %s137_s2 }
  0x14   :  { %v87_v30 = vsel %vm86_vm5, %v71_v5, 0.0  ;;  %vm104_vm8 = vcmp.eq.s32.totalorder %v65_v24, 3 }
  0x15   :  { %v78_v12 = vmax.f32 %v75_v10, %v77_v9  ;;  %v93_v31 = vsel %vm92_vm6, %v74_v6, %v87_v30 }
  0x16   :  { %v99_v32 = vsel %vm98_vm7, %v77_v9, %v93_v31  ;;  %v110_v37 = vld [vmem:[#allocation2] sm:$0xff] }
  0x17   :  { %v81_v13 = vmax.f32 %v78_v12, %v80_v11  ;;  %v105_v35 = vsel %vm104_vm8, %v80_v11, %v99_v32 }
  0x19   :  { %v82_v14 = vsub.f32 %v71_v5, %v81_v13  ;;  %v88_v15 = vsub.f32 %v74_v6, %v81_v13  ;;  %v94_v16 = vsub.f32 %v77_v9, %v81_v13  ;;  %v100_v17 = vsub.f32 %v80_v11, %v81_v13 }
  0x1b   :  { %v83_v18 = vmul.f32 1.442695, %v82_v14  ;;  %v89_v19 = vmul.f32 1.442695, %v88_v15  ;;  %v95_v20 = vmul.f32 1.442695, %v94_v16 }
  0x1c   :  { %v101_v21 = vmul.f32 1.442695, %v100_v17 }
  0x1d   :  { %159 = vpow2.f32 %v83_v18 }
  0x1e   :  { %161 = vpow2.f32 %v89_v19 }
  0x1f   :  { %163 = vpow2.f32 %v95_v20 }
  0x20   :  { %165 = vpow2.f32 %v101_v21 }
  0x23   :  { %v160_v22 = vpop.eup %159 }
  0x24   :  { %v162_v23 = vpop.eup %161 }
  0x25   :  { %v164_v25 = vpop.eup %163  ;;  %v91_v26 = vadd.f32 %v162_v23, %v160_v22 }
  0x26   :  { %v166_v27 = vpop.eup %165 }
  0x27   :  { %v97_v28 = vadd.f32 %v164_v25, %v91_v26 }
  0x29   :  { %v103_v29 = vadd.f32 %v166_v27, %v97_v28 }
  0x2b   :  { %167 = vlog2.f32 %v103_v29 }
  0x31   :  { %v168_v33 = vpop.eup %167 }
  0x32   :  { %v107_v34 = vmul.f32 0.6931472, %v168_v33 }
  0x34   :  { %v108_v36 = vadd.f32 %v107_v34, %v81_v13 }
  0x36   :  { %v109_v38 = vsub.f32 %v108_v36, %v105_v35 }
  0x38   :  { %v111_v39 = vadd.f32 %v110_v37, %v109_v38 }
  0x3a   :  { %113 = vst.msk [vmem:[#allocation2] sm:$0xff] %vm62_vm0, %v111_v39 }
  0x41   :  { %v117_v40 = vld [vmem:[#allocation2] sm:$0xff] }
  0x42   :  { %v118_v41 = vsel %vm62_vm0, %v117_v40, 0.0 }
  0x43   :  { %119 = vadd.xlane.f32.xlu0 %v118_v41 }
  0xb6   :  { %v120_v42 = vpop.xlane.xlu0 %119 }
  0xb7   :  { %v121_v43 = vrot.slane %v120_v42, 4 }
  0xb9   :  { %v122_v44 = vadd.f32 %v121_v43, %v120_v42 }
  0xbb   :  { %v123_v45 = vrot.slane %v122_v44, 2 }
  0xbd   :  { %v124_v46 = vadd.f32 %v123_v45, %v122_v44 }
  0xbf   :  { %v125_v47 = vrot.slane %v124_v46, 1 }
  0xc1   :  { %v126_v48 = vadd.f32 %v125_v47, %v124_v46 }
  0xc3   :  { %150 = vpush %v126_v48 }
  0xf4   :  { %s151_s4 = spop %150 }
  0xf5   :  { %s128_s5 = smul.f32 0.001, %s151_s4 }
  0xf7   :  { %v129_v49 = vstv %s128_s5 }
  0xf8   :  { %131 = vst.msk [vmem:[#allocation9] sm:$0x1] %vm130_vm9, %v129_v49 }
  0xf9   :  { %142 = dma.vmem_to_hbm [thread:$0]  %s138_s2, 16, %s140_s30, [#allocation5]  }
  0xfa   :  { %269 = dma.done.wait [#allocation5], 16  }
  0xfb   :  { %270 = vsyncadd [#allocation5], 4294967280 }
  0xfc   :  { %147 = vsyncpa [#allocation4], 1 }
  0xfd   :  { %148 = vsyncpa [#allocation7], 1 }
  0xfe   :  { %149 = vsyncpa [#allocation5], 1 }

</bundles_post_ra>
